<compile_context>
chip_gen: v6e
topology: v6e:2x2x1
jax: 0.10.0
libtpu: 0.0.40
codegen_flags: <defaults>
</compile_context>

<pallas_src>
import functools

import jax
import jax.numpy as jnp
from jax import lax
from jax.experimental import pallas as pl
from jax.experimental.pallas import tpu as pltpu


def _round_up(x, m):
    return ((x + m - 1) // m) * m


# ----------------------------------------------------------------------------
# Kernels.  The x tile arrives row-major (TILE_N, F); layer 1 contracts the
# minor dim of both operands (A @ B^T) so h / g / outputs come out
# feature-major with N on the lane axis (lane-dense, no HBM transpose).
# ----------------------------------------------------------------------------
def _make_fused_kernel(num_class, act_dtype):
    """3-matmul chain with block-diagonal fused layer-2/3 weights (small F)."""

    def kernel(x_ref, w1_ref, b1_ref, w2_ref, b2_ref, w3_ref, b3_ref,
               t_out_ref, s_out_ref):
        x = x_ref[...].astype(jnp.bfloat16)                           # (TN, F)
        h = lax.dot_general(w1_ref[...], x, (((1,), (1,)), ((), ())),
                            preferred_element_type=jnp.float32)       # (2H1, TN)
        h = jnp.maximum(h.astype(act_dtype) + b1_ref[...].astype(act_dtype), 0)
        h = h.astype(jnp.bfloat16)
        g = jnp.dot(w2_ref[...], h, preferred_element_type=jnp.float32)   # (2H2, TN)
        g = jnp.maximum(g.astype(act_dtype) + b2_ref[...].astype(act_dtype), 0)
        g = g.astype(jnp.bfloat16)
        o = jnp.dot(w3_ref[...], g, preferred_element_type=jnp.float32)   # (C+1, TN)
        o = o + b3_ref[...]                                               # f32 bias add
        t_out_ref[...] = o[:num_class, :].astype(t_out_ref.dtype)
        s_out_ref[...] = o[num_class:, :].astype(s_out_ref.dtype)

    return kernel


def _make_split_kernel(num_class, h1, h2, act_dtype):
    """Separate teacher/student layer-2/3 dots (large F, no zero-block FLOPs)."""

    def kernel(x_ref, w1_ref, b1_ref, tw2_ref, sw2_ref, b2_ref,
               tw3_ref, sw3_ref, b3_ref, t_out_ref, s_out_ref):
        x = x_ref[...].astype(jnp.bfloat16)                           # (TN, F)
        h = lax.dot_general(w1_ref[...], x, (((1,), (1,)), ((), ())),
                            preferred_element_type=jnp.float32)       # (2H1, TN)
        h = jnp.maximum(h.astype(act_dtype) + b1_ref[...].astype(act_dtype), 0)
        h = h.astype(jnp.bfloat16)
        h_t, h_s = h[:h1, :], h[h1:, :]

        b2 = b2_ref[...].astype(act_dtype)
        g_t = jnp.dot(tw2_ref[...], h_t, preferred_element_type=jnp.float32)
        g_t = jnp.maximum(g_t.astype(act_dtype) + b2[:h2], 0).astype(jnp.bfloat16)
        g_s = jnp.dot(sw2_ref[...], h_s, preferred_element_type=jnp.float32)
        g_s = jnp.maximum(g_s.astype(act_dtype) + b2[h2:], 0).astype(jnp.bfloat16)

        b3 = b3_ref[...]
        o_t = jnp.dot(tw3_ref[...], g_t, preferred_element_type=jnp.float32)
        o_s = jnp.dot(sw3_ref[...], g_s, preferred_element_type=jnp.float32)
        t_out_ref[...] = (o_t + b3[:num_class]).astype(t_out_ref.dtype)
        s_out_ref[...] = (o_s + b3[num_class:]).astype(s_out_ref.dtype)

    return kernel


# ----------------------------------------------------------------------------
# Per-generation knobs and tile sizing.
# ----------------------------------------------------------------------------
def _device_info():
    """(activation dtype for bias+ReLU, VMEM limit bytes) per TPU generation."""
    try:
        kind = jax.devices()[0].device_kind.lower()
    except Exception:  # pragma: no cover
        kind = ""
    pre_v6 = any(t in kind for t in ("v2", "v3", "v4", "v5"))     # no bf16 VPU
    big_vmem = any(t in kind for t in ("v4", "v5", "v6"))         # 128 MiB physical
    act_dtype = jnp.float32 if pre_v6 else jnp.bfloat16
    vmem_limit = (96 if big_vmem else 48) * 1024 * 1024           # v7x: 64 MiB phys.
    return act_dtype, vmem_limit


def _pick_tile_n(feature_dim, c_out, n_pad, act_bytes, vmem_budget):
    """Largest lane-tile keeping the per-step live set under the VMEM budget."""
    per_col = (2 * 4 * feature_dim                 # x block (f32), double-buffered
               + 4 * feature_dim                   # layer-1 f32 accumulator
               + act_bytes * feature_dim           # h
               + act_bytes * (feature_dim // 2)    # g
               + 2 * (2 * (c_out - 1) + 4))        # bf16 + f32 outputs, double-buffered
    tile = max(128, min(vmem_budget // max(per_col, 1), 8192, n_pad))
    tile = (tile // 128) * 128
    # Balance blocks across the grid: same number of steps, near-equal sizes
    # (avoids a nearly-empty ragged last tile; keeps both TCs busy on v7x).
    steps = pl.cdiv(n_pad, tile)
    tile = min(n_pad, _round_up(pl.cdiv(n_pad, steps), 128))
    return tile


# ----------------------------------------------------------------------------
# Wrapper: fused teacher + student MLP over flattened rows.
# ----------------------------------------------------------------------------
def mlp_pair(x_flat, params, *, tile_n=None):
    """x_flat: (N, F).  Returns (teacher_logits (N, C) f32, student_weight (N,) f32)."""
    n_rows, feature_dim = x_flat.shape
    num_class = params["tw3"].shape[0]
    h1, h2 = params["tw2"].shape[1], params["tw2"].shape[0]
    act_dtype, vmem_limit = _device_info()
    act_bytes = jnp.dtype(act_dtype).itemsize

    # Pad N to the lane width only (<=127 rows).  Callers with N % 128 == 0 pay
    # no copy at all (x goes straight into the kernel in its native layout).
    n_pad = _round_up(max(n_rows, 1), 128)
    if n_pad != n_rows:
        x_flat = jnp.pad(x_flat, ((0, n_pad - n_rows), (0, 0)))

    if tile_n is None:
        tile_n = _pick_tile_n(feature_dim, num_class + 1, n_pad, act_bytes,
                              int(0.7 * vmem_limit))
    else:
        tile_n = min(_round_up(max(tile_n, 128), 128), n_pad)
    grid = (pl.cdiv(n_pad, tile_n),)

    # ---- pack weights (PyTorch (out, in) layout), bf16 for the MXU ---------
    w1 = jnp.concatenate([params["tw1"], params["sw1"]], axis=0).astype(jnp.bfloat16)
    b1 = jnp.concatenate([params["tb1"], params["sb1"]])[:, None].astype(jnp.float32)
    b2 = jnp.concatenate([params["tb2"], params["sb2"]])[:, None].astype(jnp.float32)
    b3 = jnp.concatenate([params["tb3"], params["sb3"]])[:, None].astype(jnp.float32)

    def const(shape):  # VMEM-resident operand (same block every grid step)
        return pl.BlockSpec(shape, lambda i: (0,) * len(shape))

    x_spec = pl.BlockSpec((tile_n, feature_dim), lambda i: (i, 0))

    split_23 = h1 >= 128          # layer-2/3 operands reach an MXU tile -> de-fuse
    if split_23:
        kernel = _make_split_kernel(num_class, h1, h2, act_dtype)
        tw2 = params["tw2"].astype(jnp.bfloat16)
        sw2 = params["sw2"].astype(jnp.bfloat16)
        tw3 = params["tw3"].astype(jnp.bfloat16)
        sw3 = params["sw3"].astype(jnp.bfloat16)
        operands = (x_flat, w1, b1, tw2, sw2, b2, tw3, sw3, b3)
        in_specs = [x_spec, const(w1.shape), const(b1.shape),
                    const(tw2.shape), const(sw2.shape), const(b2.shape),
                    const(tw3.shape), const(sw3.shape), const(b3.shape)]
        l23_flops = 2 * n_pad * (2 * h2 * h1 + (num_class + 1) * h2)
    else:
        kernel = _make_fused_kernel(num_class, act_dtype)
        w2 = jnp.zeros((2 * h2, 2 * h1), jnp.float32)
        w2 = w2.at[:h2, :h1].set(params["tw2"]).at[h2:, h1:].set(params["sw2"])
        w2 = w2.astype(jnp.bfloat16)
        w3 = jnp.zeros((num_class + 1, 2 * h2), jnp.float32)
        w3 = (w3.at[:num_class, :h2].set(params["tw3"])
                .at[num_class:, h2:].set(params["sw3"])).astype(jnp.bfloat16)
        operands = (x_flat, w1, b1, w2, b2, w3, b3)
        in_specs = [x_spec, const(w1.shape), const(b1.shape),
                    const(w2.shape), const(b2.shape),
                    const(w3.shape), const(b3.shape)]
        l23_flops = 2 * n_pad * (w2.shape[0] * w2.shape[1]
                                 + w3.shape[0] * w3.shape[1])

    out_shape = (jax.ShapeDtypeStruct((num_class, n_pad), jnp.bfloat16),
                 jax.ShapeDtypeStruct((1, n_pad), jnp.float32))
    out_specs = (pl.BlockSpec((num_class, tile_n), lambda i: (0, i)),  # lane-dense
                 pl.BlockSpec((1, tile_n), lambda i: (0, i)))

    flops = 2 * n_pad * w1.shape[0] * w1.shape[1] + l23_flops
    weight_bytes = sum(int(o.size) * o.dtype.itemsize for o in operands[1:])
    bytes_accessed = (int(x_flat.size) * x_flat.dtype.itemsize
                      + n_pad * (2 * num_class + 4) + weight_bytes)

    t_out, s_out = pl.pallas_call(
        kernel,
        grid=grid,
        in_specs=in_specs,
        out_specs=out_specs,
        out_shape=out_shape,
        compiler_params=pltpu.CompilerParams(
            dimension_semantics=("parallel",),          # megacore sharding on v7x
            vmem_limit_bytes=vmem_limit),
        cost_estimate=pl.CostEstimate(flops=flops, transcendentals=0,
                                      bytes_accessed=bytes_accessed),
    )(*operands)

    teacher_logits = t_out[:, :n_rows].T.astype(jnp.float32)   # (N, C)
    student_weight = s_out[0, :n_rows]                          # (N,) f32
    return teacher_logits, student_weight


# ----------------------------------------------------------------------------
# Forward pass (losses kept in plain JAX; tiny after the valid-index gather).
# ----------------------------------------------------------------------------
def forward(params, feature_input, labels, valid_indices, *, tile_n=None):
    batch, seq, _ = feature_input.shape
    num_class = params["tw3"].shape[0]
    x_flat = feature_input.reshape(batch * seq, -1)

    teacher_logits_flat, weight_flat = mlp_pair(x_flat, params, tile_n=tile_n)

    teacher_logits = teacher_logits_flat.reshape(batch, seq, num_class)
    weight_param = weight_flat.reshape(batch, seq, 1)

    # teacher_logits_expand = teacher_logits.view(-1, C)[valid_indices]
    tl = teacher_logits_flat[valid_indices]                       # (Nv, C)
    probs = jax.nn.softmax(tl, axis=-1)                           # F.softmax(...)

    # CE_loss(F.softmax(logits), labels): CrossEntropyLoss re-applies
    # log_softmax (double softmax) -- kept for parity with the PyTorch module.
    logp = jax.nn.log_softmax(probs, axis=-1)
    teacher_training_ce = -jnp.mean(
        jnp.take_along_axis(logp, labels[:, None], axis=-1))

    # teacher_predict = gather(softmax(logits) * C, -1, labels.unsqueeze(-1))
    teacher_predict = jnp.take_along_axis(
        probs * num_class, labels[:, None], axis=-1)[:, 0]        # (Nv,)

    # student_predict = weight_param.view(-1)[valid_indices]
    student_predict = weight_flat[valid_indices]                  # (Nv,)

    # PyTorch MSELoss((Nv,), (Nv,1)) broadcasts to an (Nv,Nv) all-pairs MSE.
    # Closed form of mean_{i,j}(s_j - t_i)^2 -- identical value, O(Nv) memory.
    weight_mse = (jnp.mean(student_predict ** 2)
                  + jnp.mean(teacher_predict ** 2)
                  - 2.0 * jnp.mean(student_predict) * jnp.mean(teacher_predict))

    return weight_param, teacher_training_ce, weight_mse, teacher_logits


# ----------------------------------------------------------------------------
# Pure-JAX f32 reference (mirrors the PyTorch module) for validation.
# ----------------------------------------------------------------------------
def reference_forward(params, feature_input, labels, valid_indices):
    batch, seq, _ = feature_input.shape
    num_class = params["tw3"].shape[0]
    x = feature_input.reshape(batch * seq, -1)

    def mlp(xx, w1, bb1, w2, bb2, w3, bb3):
        h = jnp.maximum(xx @ w1.T + bb1, 0.0)
        g = jnp.maximum(h @ w2.T + bb2, 0.0)
        return g @ w3.T + bb3

    t = mlp(x, params["tw1"], params["tb1"], params["tw2"], params["tb2"],
            params["tw3"], params["tb3"])                          # (N, C)
    s = mlp(x, params["sw1"], params["sb1"], params["sw2"], params["sb2"],
            params["sw3"], params["sb3"])                          # (N, 1)

    tl = t[valid_indices]
    probs = jax.nn.softmax(tl, axis=-1)
    logp = jax.nn.log_softmax(probs, axis=-1)
    ce = -jnp.mean(jnp.take_along_axis(logp, labels[:, None], axis=-1))
    teacher_predict = jnp.take_along_axis(
        probs * num_class, labels[:, None], axis=-1)[:, 0]
    student_predict = s.reshape(-1)[valid_indices]
    mse = jnp.mean((student_predict[None, :] - teacher_predict[:, None]) ** 2)
    return s.reshape(batch, seq, 1), ce, mse, t.reshape(batch, seq, num_class)


# ----------------------------------------------------------------------------
# Deterministic init (PyTorch Linear default U(-k, k), k = 1/sqrt(fan_in)).
# Weights in PyTorch layout (out_features, in_features); biases (out,).
# ----------------------------------------------------------------------------
def init_params(key, feature_dim, num_class):
    dims = [("tw1", "tb1", feature_dim // 2, feature_dim),
            ("tw2", "tb2", feature_dim // 4, feature_dim // 2),
            ("tw3", "tb3", num_class, feature_dim // 4),
            ("sw1", "sb1", feature_dim // 2, feature_dim),
            ("sw2", "sb2", feature_dim // 4, feature_dim // 2),
            ("sw3", "sb3", 1, feature_dim // 4)]
    params = {}
    keys = jax.random.split(key, 2 * len(dims))
    for i, (wn, bn, fout, fin) in enumerate(dims):
        k = 1.0 / jnp.sqrt(jnp.float32(fin))
        params[wn] = jax.random.uniform(keys[2 * i], (fout, fin), jnp.float32, -k, k)
        params[bn] = jax.random.uniform(keys[2 * i + 1], (fout,), jnp.float32, -k, k)
    return params


# ----------------------------------------------------------------------------
# Self-test.
# ----------------------------------------------------------------------------
def _assert_close(name, got, want, atol=5e-2, rtol=5e-2):
    got = jnp.asarray(got, jnp.float32)
    want = jnp.asarray(want, jnp.float32)
    ok = bool(jnp.all(jnp.abs(got - want) <= atol + rtol * jnp.abs(want)))
    assert ok, f"{name}: max abs err {float(jnp.max(jnp.abs(got - want)))}"


def _run_case(seed, model_dim, dim_times, num_class, batch, seq, n_valid,
              tile_n=None):
    feature_dim = model_dim * dim_times
    key = jax.random.PRNGKey(seed)
    k_param, k_x, k_lab, k_idx = jax.random.split(key, 4)
    params = init_params(k_param, feature_dim, num_class)
    feature_input = jax.random.normal(k_x, (batch, seq, feature_dim), jnp.float32)
    n_rows = batch * seq
    valid_indices = jnp.sort(
        jax.random.permutation(k_idx, n_rows)[:n_valid]).astype(jnp.int32)
    labels = jax.random.randint(k_lab, (n_valid,), 0, num_class, jnp.int32)

    fwd = jax.jit(functools.partial(forward, tile_n=tile_n))
    out = fwd(params, feature_input, labels, valid_indices)
    jax.block_until_ready(out)
    weight_param, ce, mse, teacher_logits = out

    assert weight_param.shape == (batch, seq, 1)
    assert teacher_logits.shape == (batch, seq, num_class)
    assert ce.shape == () and mse.shape == ()
    assert bool(jnp.isfinite(ce)) and bool(jnp.isfinite(mse))

    r_weight, r_ce, r_mse, r_logits = reference_forward(
        params, feature_input, labels, valid_indices)
    _assert_close("teacher_logits", teacher_logits, r_logits)
    _assert_close("weight_param", weight_param, r_weight)
    _assert_close("ce_loss", ce, r_ce)
    _assert_close("mse_loss", mse, r_mse)


if __name__ == "__main__":
    # Small case: F=32 -> fused block-diagonal layer-2/3 path; N=16 (lane pad).
    _run_case(seed=0, model_dim=16, dim_times=2, num_class=4, batch=2, seq=8,
              n_valid=8)
    # Larger case: F=512 -> de-fused layer-2/3 path, ragged N padding,
    # forced tile_n=128 so the grid has 2 steps (exercises pipelining/megacore).
    _run_case(seed=1, model_dim=256, dim_times=2, num_class=7, batch=2, seq=120,
              n_valid=64, tile_n=128)
    print("KERNEL_OK")
</pallas_src>

<mosaic_0001>
module attributes {stable_mosaic.version = 11 : i64} {
  func.func @kernel(%arg0: i32, %arg1: memref<128x32xf32, #tpu.memory_space<vmem>>, %arg2: memref<32x32xbf16, #tpu.memory_space<vmem>>, %arg3: memref<32x1xf32, #tpu.memory_space<vmem>>, %arg4: memref<16x32xbf16, #tpu.memory_space<vmem>>, %arg5: memref<16x1xf32, #tpu.memory_space<vmem>>, %arg6: memref<5x16xbf16, #tpu.memory_space<vmem>>, %arg7: memref<5x1xf32, #tpu.memory_space<vmem>>, %arg8: memref<4x128xbf16, #tpu.memory_space<vmem>>, %arg9: memref<1x128xf32, #tpu.memory_space<vmem>>) attributes {dimension_semantics = [#tpu.dimension_semantics<parallel>], iteration_bounds = array<i64: 1>, scalar_prefetch = 0 : i64, scratch_operands = 0 : i64, tpu.core_type = #tpu.core_type<tc>, window_params = [{transform_indices = @transform_0, window_bounds = array<i64: 128, 32>}, {pipeline_mode = #tpu.pipeline_mode<synchronous>, transform_indices = @transform_1, window_bounds = array<i64: 32, 32>}, {pipeline_mode = #tpu.pipeline_mode<synchronous>, transform_indices = @transform_2, window_bounds = array<i64: 32, 1>}, {pipeline_mode = #tpu.pipeline_mode<synchronous>, transform_indices = @transform_3, window_bounds = array<i64: 16, 32>}, {pipeline_mode = #tpu.pipeline_mode<synchronous>, transform_indices = @transform_4, window_bounds = array<i64: 16, 1>}, {pipeline_mode = #tpu.pipeline_mode<synchronous>, transform_indices = @transform_5, window_bounds = array<i64: 5, 16>}, {pipeline_mode = #tpu.pipeline_mode<synchronous>, transform_indices = @transform_6, window_bounds = array<i64: 5, 1>}, {transform_indices = @transform_7, window_bounds = array<i64: 4, 128>}, {transform_indices = @transform_8, window_bounds = array<i64: 1, 128>}]} {
    %c0 = arith.constant 0 : index
    %c0_0 = arith.constant 0 : index
    %0 = vector.load %arg1[%c0, %c0_0] : memref<128x32xf32, #tpu.memory_space<vmem>>, vector<128x32xf32>
    %1 = arith.truncf %0 : vector<128x32xf32> to vector<128x32xbf16>
    %c0_1 = arith.constant 0 : index
    %c0_2 = arith.constant 0 : index
    %2 = vector.load %arg2[%c0_1, %c0_2] : memref<32x32xbf16, #tpu.memory_space<vmem>>, vector<32x32xbf16>
    %cst = arith.constant dense<0.000000e+00> : vector<32x128xf32>
    %3 = tpu.matmul %2, %1, %cst {dimension_numbers = #tpu.dot_dimension_numbers<[1], [1], [0], [0], [0, 0, 1, 0], [], []>} : vector<32x32xbf16>, vector<128x32xbf16>, vector<32x128xf32> -> vector<32x128xf32>
    %4 = arith.truncf %3 : vector<32x128xf32> to vector<32x128xbf16>
    %c0_3 = arith.constant 0 : index
    %c0_4 = arith.constant 0 : index
    %5 = vector.load %arg3[%c0_3, %c0_4] : memref<32x1xf32, #tpu.memory_space<vmem>>, vector<32x1xf32>
    %6 = arith.truncf %5 : vector<32x1xf32> to vector<32x1xbf16>
    %7 = vector.broadcast %6 : vector<32x1xbf16> to vector<32x128xbf16>
    %8 = arith.addf %4, %7 : vector<32x128xbf16>
    %cst_5 = arith.constant 0.000000e+00 : bf16
    %9 = vector.broadcast %cst_5 : bf16 to vector<32x128xbf16>
    %10 = arith.maximumf %8, %9 : vector<32x128xbf16>
    %c0_6 = arith.constant 0 : index
    %c0_7 = arith.constant 0 : index
    %11 = vector.load %arg4[%c0_6, %c0_7] : memref<16x32xbf16, #tpu.memory_space<vmem>>, vector<16x32xbf16>
    %cst_8 = arith.constant dense<0.000000e+00> : vector<16x128xf32>
    %12 = tpu.matmul %11, %10, %cst_8 {dimension_numbers = #tpu.dot_dimension_numbers<[1], [0], [0], [1], [0, 0, 1, 1], [], []>} : vector<16x32xbf16>, vector<32x128xbf16>, vector<16x128xf32> -> vector<16x128xf32>
    %13 = arith.truncf %12 : vector<16x128xf32> to vector<16x128xbf16>
    %c0_9 = arith.constant 0 : index
    %c0_10 = arith.constant 0 : index
    %14 = vector.load %arg5[%c0_9, %c0_10] : memref<16x1xf32, #tpu.memory_space<vmem>>, vector<16x1xf32>
    %15 = arith.truncf %14 : vector<16x1xf32> to vector<16x1xbf16>
    %16 = vector.broadcast %15 : vector<16x1xbf16> to vector<16x128xbf16>
    %17 = arith.addf %13, %16 : vector<16x128xbf16>
    %cst_11 = arith.constant 0.000000e+00 : bf16
    %18 = vector.broadcast %cst_11 : bf16 to vector<16x128xbf16>
    %19 = arith.maximumf %17, %18 : vector<16x128xbf16>
    %c0_12 = arith.constant 0 : index
    %c0_13 = arith.constant 0 : index
    %20 = vector.load %arg6[%c0_12, %c0_13] : memref<5x16xbf16, #tpu.memory_space<vmem>>, vector<5x16xbf16>
    %cst_14 = arith.constant dense<0.000000e+00> : vector<5x128xf32>
    %21 = tpu.matmul %20, %19, %cst_14 {dimension_numbers = #tpu.dot_dimension_numbers<[1], [0], [0], [1], [0, 0, 1, 1], [], []>} : vector<5x16xbf16>, vector<16x128xbf16>, vector<5x128xf32> -> vector<5x128xf32>
    %c0_15 = arith.constant 0 : index
    %c0_16 = arith.constant 0 : index
    %22 = vector.load %arg7[%c0_15, %c0_16] : memref<5x1xf32, #tpu.memory_space<vmem>>, vector<5x1xf32>
    %23 = vector.broadcast %22 : vector<5x1xf32> to vector<5x128xf32>
    %24 = arith.addf %21, %23 : vector<5x128xf32>
    %25 = vector.extract_strided_slice %24 {offsets = [0, 0], sizes = [4, 128], strides = [1, 1]} : vector<5x128xf32> to vector<4x128xf32>
    %26 = arith.truncf %25 : vector<4x128xf32> to vector<4x128xbf16>
    %c0_17 = arith.constant 0 : index
    %c0_18 = arith.constant 0 : index
    %27 = vector.load %arg8[%c0_17, %c0_18] : memref<4x128xbf16, #tpu.memory_space<vmem>>, vector<4x128xbf16>
    tpu.vector_store %arg8[%c0_17, %c0_18], %26 {strides = array<i32>} : memref<4x128xbf16, #tpu.memory_space<vmem>>, vector<4x128xbf16>,
    %28 = vector.extract_strided_slice %24 {offsets = [4, 0], sizes = [1, 128], strides = [1, 1]} : vector<5x128xf32> to vector<1x128xf32>
    %c0_19 = arith.constant 0 : index
    %c0_20 = arith.constant 0 : index
    %29 = vector.load %arg9[%c0_19, %c0_20] : memref<1x128xf32, #tpu.memory_space<vmem>>, vector<1x128xf32>
    tpu.vector_store %arg9[%c0_19, %c0_20], %28 {strides = array<i32>} : memref<1x128xf32, #tpu.memory_space<vmem>>, vector<1x128xf32>,
    return
  }
  func.func @transform_0(%arg0: i32) -> (i32, i32) {
    %c0_i32 = arith.constant 0 : i32
    %c0_i32_0 = arith.constant 0 : i32
    return %arg0, %c0_i32 : i32, i32
  }
  func.func @transform_1(%arg0: i32) -> (i32, i32) {
    %c0_i32 = arith.constant 0 : i32
    %c0_i32_0 = arith.constant 0 : i32
    %c0_i32_1 = arith.constant 0 : i32
    return %c0_i32, %c0_i32_0 : i32, i32
  }
  func.func @transform_2(%arg0: i32) -> (i32, i32) {
    %c0_i32 = arith.constant 0 : i32
    %c0_i32_0 = arith.constant 0 : i32
    %c0_i32_1 = arith.constant 0 : i32
    return %c0_i32, %c0_i32_0 : i32, i32
  }
  func.func @transform_3(%arg0: i32) -> (i32, i32) {
    %c0_i32 = arith.constant 0 : i32
    %c0_i32_0 = arith.constant 0 : i32
    %c0_i32_1 = arith.constant 0 : i32
    return %c0_i32, %c0_i32_0 : i32, i32
  }
  func.func @transform_4(%arg0: i32) -> (i32, i32) {
    %c0_i32 = arith.constant 0 : i32
    %c0_i32_0 = arith.constant 0 : i32
    %c0_i32_1 = arith.constant 0 : i32
    return %c0_i32, %c0_i32_0 : i32, i32
  }
  func.func @transform_5(%arg0: i32) -> (i32, i32) {
    %c0_i32 = arith.constant 0 : i32
    %c0_i32_0 = arith.constant 0 : i32
    %c0_i32_1 = arith.constant 0 : i32
    return %c0_i32, %c0_i32_0 : i32, i32
  }
  func.func @transform_6(%arg0: i32) -> (i32, i32) {
    %c0_i32 = arith.constant 0 : i32
    %c0_i32_0 = arith.constant 0 : i32
    %c0_i32_1 = arith.constant 0 : i32
    return %c0_i32, %c0_i32_0 : i32, i32
  }
  func.func @transform_7(%arg0: i32) -> (i32, i32) {
    %c0_i32 = arith.constant 0 : i32
    %c0_i32_0 = arith.constant 0 : i32
    return %c0_i32, %arg0 : i32, i32
  }
  func.func @transform_8(%arg0: i32) -> (i32, i32) {
    %c0_i32 = arith.constant 0 : i32
    %c0_i32_0 = arith.constant 0 : i32
    return %c0_i32, %arg0 : i32, i32
  }
}

</mosaic_0001>

<bundles_post_ra>
// kernel: squeeze.4
= control target key start
LH: loop header
LB: loop body
LE: loop exit
PB: predicated region body
PF: predicated region fallthrough
CT: control target
= control target key end

     0   :  { %s77_s0 = inlined_call_operand.vmem [shape: f32[16], index: 0, kind: input, shape index: {}]   ;;  %s78_s1 = inlined_call_operand.hbm [shape: f32[2,8,1], index: 1, kind: output, shape index: {}]  }
   0x1   :  { %v6_v0 = vld [vmem:[%s77_s0] sm:$0x1] }
   0x2   :  { %2 = vsyncpa [#allocation1], 0  ;;  %7 = vst [vmem:[#allocation3] sm:$0x1] %v6_v0  ;;  %vm9_vm0 = vcmask 64512   ;;  %s59_s0 = smov 120  }
   0x3   :  { %s60_s8 = smov [#allocation0]  }
   0x4   :  { %s29_s9 = sshll.u32 %s60_s8, 4  ;;  %s30_s9 = int_to_ptr.vmem [resolvable:$true] %s29_s9 }
   0x5   :  { %s37_s10 = scalar_lea.vmem %s30_s9, 32  ;;  %p42_p1 = scmp.lt.s32.totalorder %s30_s9, %s30_s9 }
   0x6   :  { %p38_p0 = scmp.ne.s32.totalorder %s30_s9, %s37_s10  ;;  %p43_p2 = scmp.lt.s32.totalorder %s37_s10, %s37_s10 }
   0x8   :  { %p44_p3 = por %p43_p2, %p42_p1 }
   0x9   :  { %v11_v1 = vld [vmem:[#allocation3] sm:$0x1]  }
   0xa   :  { %v8_v2 = vld [vmem:[#allocation3] sm:$0x1]   ;;  %12 = vrot.lane.b32.xlu0 %v11_v1, %s59_s0  ;;  %p45_p4 = pnand %p44_p3, %p38_p0 }
   0xb   :  { %10 = vst.msk [vmem:[#allocation2] sm:$0x1] %vm9_vm0, %v8_v2  }
  0x7c   :  { %v13_v3 = vpop.permute.xlu0 %12  }
  0x7d   :  { %16 = vst.msk [vmem:[#allocation2 + $0x1] sm:$0x1] %vm9_vm0, %v13_v3  }
  0x84   :  { %v21_v4 = vld [vmem:[#allocation2] sm:$0x3] }
  0x85   :  { %24 = vst [vmem:[#allocation0] sm:$0x3] %v21_v4 }
  0x86   :  { %48 = shalt.err (!%p45_p4)
}
  0x87   :  { %32 = dma.vmem_to_hbm [thread:$0]  %s30_s9, 32, %s78_s1, [#allocation1]  }
  0x88   :  { %57 = dma.done.wait [#allocation1], 32  }
  0x89   :  { %58 = vsyncadd [#allocation1], 4294967264 }
  0x8a   :  { %34 = vsyncpa [#allocation1], 1 }

// kernel: forward.1
= control target key start
LH: loop header
LB: loop body
LE: loop exit
PB: predicated region body
PF: predicated region fallthrough
CT: control target
= control target key end

     0   :  { %vm67_vm0 = vcmask 261120   ;;  %v365_v3 = vmov 0   ;;  %v366_v41 = vmov 0.0   ;;  %vm367_vm1 = vmmov 0   ;;  %s526_s0 = inlined_call_operand.vmem [shape: f32[128,32], index: 0, kind: input, shape index: {}]   ;;  %s527_s1 = inlined_call_operand.vmem [shape: bf16[32,32], index: 1, kind: input, shape index: {}]   ;;  %s528_s2 = inlined_call_operand.vmem [shape: f32[32,1], index: 2, kind: input, shape index: {}]   ;;  %s529_s3 = inlined_call_operand.vmem [shape: bf16[16,32], index: 3, kind: input, shape index: {}]   ;;  %s530_s4 = inlined_call_operand.vmem [shape: f32[16,1], index: 4, kind: input, shape index: {}]   ;;  %s531_s6 = inlined_call_operand.vmem [shape: f32[5,1], index: 6, kind: input, shape index: {}]   ;;  %s532_s5 = inlined_call_operand.vmem [shape: bf16[5,16], index: 5, kind: input, shape index: {}]   ;;  %s533_s8 = inlined_call_operand.vmem [shape: f32[1,128], index: 8, kind: output, shape index: {1}]   ;;  %s534_s7 = inlined_call_operand.vmem [shape: bf16[4,128], index: 7, kind: output, shape index: {0}]  }
   0x1   :  { %v43_v0 = vld [vmem:[%s526_s0 + $0x70] sm:$0xff]  ;;  %v44_v1 = vld [vmem:[%s526_s0 + $0x78] sm:$0xff]  ;;  %v41_v2 = vld [vmem:[%s526_s0 + $0x60] sm:$0xff]  ;;  %360 = vset.pattern.permute.xlu0 %v365_v3  ;;  %361 = vset.pattern.permute.xlu1 %v365_v3  ;;  %vm238_vm2 = vcmask 130048  }
   0x2   :  { %v52_v4 = vpack.c.bf16 %v44_v1, %v43_v0  ;;  %v42_v5 = vld [vmem:[%s526_s0 + $0x68] sm:$0xff]  ;;  %v39_v8 = vld [vmem:[%s526_s0 + $0x50] sm:$0xff]  ;;  %v40_v9 = vld [vmem:[%s526_s0 + $0x58] sm:$0xff]  ;;  %335 = vmatprep.subr.bf16.mxu1 %v366_v41  ;;  %339 = vmatprep.mubr.msk.bf16.mxu1 %vm367_vm1, %v366_v41 }
   0x3   :  { %v51_v6 = vpack.c.bf16 %v42_v5, %v41_v2  ;;  %v362_v10 = vld [vmem:[%s527_s1] sm:$0xff]   ;;  %v151_v11 = vld [vmem:[%s528_s2 + $0x10] sm:$0xff]  ;;  %v152_v12 = vld [vmem:[%s528_s2 + $0x18] sm:$0xff]  ;;  %v50_v17 = vpack.c.bf16 %v40_v9, %v39_v8 }
   0x4   :  { %349 = vmatprep.subr.msk.bf16.mxu0 %vm67_vm0, %v52_v4  ;;  %v96_v7 = vsel %vm67_vm0, %v52_v4, 0  ;;  %331 = vmatprep.mubr.msk.bf16.mxu0 %vm67_vm0, %v362_v10  ;;  %v154_v13 = vpack.c.bf16 %v152_v12, %v151_v11  ;;  %v149_v14 = vld [vmem:[%s528_s2] sm:$0xff]  ;;  %v150_v15 = vld [vmem:[%s528_s2 + $0x8] sm:$0xff]  ;;  %v35_v23 = vld [vmem:[%s526_s0 + $0x30] sm:$0xff] }
   0x5   :  { %316 = vmatpush3.bf16.xpose.msra.mxu0 %v96_v7  ;;  %v93_v16 = vsel %vm67_vm0, %v51_v6, 0  ;;  %v153_v18 = vpack.c.bf16 %v150_v15, %v149_v14  ;;  %v37_v19 = vld [vmem:[%s526_s0 + $0x40] sm:$0xff]  ;;  %v38_v20 = vld [vmem:[%s526_s0 + $0x48] sm:$0xff]  ;;  %v90_v21 = vsel %vm67_vm0, %v50_v17, 0  ;;  %v36_v24 = vld [vmem:[%s526_s0 + $0x38] sm:$0xff] }
   0x6   :  { %350 = vmatprep.subr.msk.bf16.mxu0 %vm67_vm0, %v51_v6  ;;  %162 = vperm.xlu0 %360, %v154_v13   ;;  %v49_v22 = vpack.c.bf16 %v38_v20, %v37_v19  ;;  %v48_v26 = vpack.c.bf16 %v36_v24, %v35_v23  ;;  %v33_v27 = vld [vmem:[%s526_s0 + $0x20] sm:$0xff]  ;;  %v34_v28 = vld [vmem:[%s526_s0 + $0x28] sm:$0xff]  ;;  %v31_v31 = vld [vmem:[%s526_s0 + $0x10] sm:$0xff] }
   0x7   :  { %v47_v30 = vpack.c.bf16 %v34_v28, %v33_v27  ;;  %v32_v32 = vld [vmem:[%s526_s0 + $0x18] sm:$0xff]  ;;  %v29_v35 = vld [vmem:[%s526_s0] sm:$0xff]  ;;  %v30_v36 = vld [vmem:[%s526_s0 + $0x8] sm:$0xff] }
   0x8   :  { %v87_v25 = vsel %vm67_vm0, %v49_v22, 0  ;;  %v84_v29 = vsel %vm67_vm0, %v48_v26, 0  ;;  %v46_v34 = vpack.c.bf16 %v32_v32, %v31_v31  ;;  %v45_v38 = vpack.c.bf16 %v30_v36, %v29_v35  ;;  %v363_v40 = vld [vmem:[%s527_s1 + $0x8] sm:$0xff]   ;;  %v221_v42 = vld [vmem:[%s530_s4] sm:$0xff] }
   0x9   :  { %v81_v33 = vsel %vm67_vm0, %v47_v30, 0  ;;  %v222_v43 = vld [vmem:[%s530_s4 + $0x8] sm:$0xff]  ;;  %v232_v45 = vld [vmem:[%s531_s6] sm:$0x1f] }
   0xa   :  { %157 = vperm.xlu0 %360, %v153_v18   ;;  %v78_v37 = vsel %vm67_vm0, %v46_v34, 0  ;;  %v75_v39 = vsel %vm67_vm0, %v45_v38, 0  ;;  %v223_v44 = vpack.c.bf16 %v222_v43, %v221_v42  ;;  %v364_v58 = vld [vmem:[%s529_s3] sm:$0xff]  }
   0xb   :  { %v231_v4 = vld [vmem:[%s532_s5] sm:$0x7] }
   0xc   :  { %226 = vperm.xlu1 %361, %v223_v44  }
   0xd   :  { %318 = vmatpush3.bf16.xpose.msra.mxu0 %v93_v16 }
   0xe   :  { %351 = vmatprep.subr.msk.bf16.mxu0 %vm67_vm0, %v50_v17 }
  0x10   :  { %235 = vperm.xlu1 %361, %v232_v45  }
  0x15   :  { %320 = vmatpush3.bf16.xpose.msra.mxu0 %v90_v21 }
  0x16   :  { %352 = vmatprep.subr.msk.bf16.mxu0 %vm67_vm0, %v49_v22 }
  0x1d   :  { %322 = vmatpush3.bf16.xpose.msra.mxu0 %v87_v25 }
  0x1e   :  { %353 = vmatprep.subr.msk.bf16.mxu0 %vm67_vm0, %v48_v26 }
  0x25   :  { %324 = vmatpush3.bf16.xpose.msra.mxu0 %v84_v29 }
  0x26   :  { %354 = vmatprep.subr.msk.bf16.mxu0 %vm67_vm0, %v47_v30 }
  0x2d   :  { %326 = vmatpush3.bf16.xpose.msra.mxu0 %v81_v33 }
  0x2e   :  { %355 = vmatprep.subr.msk.bf16.mxu0 %vm67_vm0, %v46_v34 }
  0x35   :  { %328 = vmatpush3.bf16.xpose.msra.mxu0 %v78_v37 }
  0x36   :  { %356 = vmatprep.subr.msk.bf16.mxu0 %vm67_vm0, %v45_v38 }
  0x3d   :  { %330 = vmatpush3.bf16.xpose.msra.mxu0 %v75_v39 }
  0x44   :  { %332 = vmatmul.mubr.msk.bf16.vlgmr.msra.gmra.mxu0 %vm67_vm0, %v363_v40 }
  0x81   :  { %v163_v47 = vpop.permute.xlu0 %162 }
  0x85   :  { %v158_v54 = vpop.permute.xlu0 %157 }
  0x87   :  { %v227_v63 = vpop.permute.xlu1 %226 }
  0x8b   :  { %v236_v5 = vpop.permute.xlu1 %235 }
 0x104   :  { %v333_v46 = vpop.f32.mrf.mxu0 }
 0x106   :  { %v132_v48 = vpop.f32.mrf.mxu0 }
 0x108   :  { %v334_v49 = vpop.f32.mrf.mxu0 }
 0x109   :  { %v148_v50 = vpack.c.bf16 %v334_v49, %v333_v46 }
 0x10a   :  { %v135_v51 = vpop.f32.mrf.mxu0 }
 0x10b   :  { %v166_v52 = vadd.bf16 %v163_v47, %v148_v50  ;;  %v147_v53 = vpack.c.bf16 %v135_v51, %v132_v48 }
 0x10d   :  { %v165_v55 = vadd.bf16 %v158_v54, %v147_v53  ;;  %v168_v56 = vmax.bf16 %v365_v3, %v166_v52 }
 0x10f   :  { %336 = vmatpush3.bf16.msra.mxu1 %v168_v56  ;;  %v167_v57 = vmax.bf16 %v365_v3, %v165_v55 }
 0x110   :  { %337 = vmatprep.subr.bf16.mxu1 %v366_v41 }
 0x113   :  { %338 = vmatpush3.bf16.msra.mxu1 %v167_v57 }
 0x114   :  { %343 = vmatprep.subr.bf16.mxu1 %v366_v41 }
 0x116   :  { %340 = vmatmul.mubr.msk.bf16.vlgmr.msra.gmra.mxu1 %vm67_vm0, %v364_v58 }
 0x117   :  { %345 = vmatprep.mubr.msk.bf16.mxu1 %vm367_vm1, %v366_v41 }
 0x1d6   :  { %v213_v59 = vpop.f32.mrf.mxu1 }
 0x1d8   :  { %v341_v60 = vpop.f32.mrf.mxu1 }
 0x1da   :  { %v216_v61 = vpop.f32.mrf.mxu1 }
 0x1db   :  { %v220_v62 = vpack.c.bf16 %v216_v61, %v213_v59 }
 0x1dc   :  { %v342_v0 = vpop.f32.mrf.mxu1 }
 0x1dd   :  { %v229_v1 = vadd.bf16 %v227_v63, %v220_v62 }
 0x1df   :  { %v230_v2 = vmax.bf16 %v365_v3, %v229_v1 }
 0x1e1   :  { %344 = vmatpush3.bf16.msra.mxu1 %v230_v2 }
 0x1e4   :  { %346 = vmatmul.mubr.msk.bf16.vlgmr.msra.gmra.mxu1 %vm238_vm2, %v231_v4 }
 0x2a4   :  { %v276_v6 = vpop.f32.mrf.mxu1 }
 0x2a5   :  { %v277_v7 = vadd.f32 %v276_v6, %v236_v5 }
 0x2a6   :  { %v347_v8 = vpop.f32.mrf.mxu1 }
 0x2a7   :  { %v282_v9 = vpack.c.bf16 %v277_v7, %v277_v7  ;;  %284 = vst [vmem:[%s533_s8 - $0x4] sm:$0x10] %v277_v7 }
 0x2a8   :  { %v279_v10 = vpop.f32.mrf.mxu1 }
 0x2a9   :  { %283 = vst [vmem:[%s534_s7] sm:$0x3] %v282_v9 }
 0x2aa   :  { %v348_v3 = vpop.f32.mrf.mxu1 }

</bundles_post_ra>
